<compile_context>
chip_gen: v7x
topology: tpu7x:2x2x1
jax: 0.10.0
libtpu: 0.0.40
codegen_flags: <defaults>
</compile_context>

<pallas_src>
import functools

import numpy as np
import jax
import jax.numpy as jnp
from jax import lax
from jax.experimental import pallas as pl
from jax.experimental.pallas import tpu as pltpu


# --------------------------- chip-aware budgets ------------------------------

def _vmem_capacity_bytes():
    try:
        info = pltpu.get_tpu_info()
        cap = getattr(info, "vmem_capacity_bytes", None)
        if cap:
            return int(cap)
    except Exception:
        pass
    return 64 * 1024 * 1024          # conservative (v7x-sized) fallback


_VMEM_CAP = _vmem_capacity_bytes()
# Headroom: ~96 MiB on v5e/v6e (128 MiB physical), ~48 MiB on v7x (64 MiB).
_VMEM_LIMIT = int(min(max(_VMEM_CAP - 16 * 1024 * 1024, 32 * 1024 * 1024),
                      96 * 1024 * 1024))
_BIG_VMEM = _VMEM_CAP > 96 * 1024 * 1024
_LIN_TM = 512 if _BIG_VMEM else 256
_LIN_TN = 512 if _BIG_VMEM else 256
_LIN_TK = 512


def _round_up(x, m):
    return ((x + m - 1) // m) * m


def _pick_tile_mult8(dim, cap):
    """Largest divisor of `dim` that is <= cap and a multiple of 8 (else dim)."""
    for t in range(min(dim, cap), 7, -1):
        if dim % t == 0 and t % 8 == 0:
            return t
    return dim


def _largest_divisor(dim, cap):
    for t in range(min(dim, cap), 0, -1):
        if dim % t == 0:
            return t
    return 1


# ----------------- fused tiled linear projection (pad + cdiv) ----------------

def _matmul_kernel(x_ref, w_ref, o_ref, acc_ref):
    @pl.when(pl.program_id(2) == 0)
    def _():
        acc_ref[...] = jnp.zeros_like(acc_ref)

    acc_ref[...] += jnp.dot(x_ref[...], w_ref[...],
                            preferred_element_type=jnp.float32)

    @pl.when(pl.program_id(2) == pl.num_programs(2) - 1)
    def _():
        o_ref[...] = acc_ref[...].astype(o_ref.dtype)


def linear(x, w, *, out_dtype=jnp.bfloat16, tm=None, tn=None, tk=None):
    """x: (M, K) bf16, w: (K, N) bf16 -> (M, N) out_dtype. f32 MXU accumulate."""
    M, K = x.shape
    K2, N = w.shape
    assert K == K2
    tm = min(_LIN_TM if tm is None else tm, _round_up(M, 8))
    tn = min(_LIN_TN if tn is None else tn, _round_up(N, 128))
    tk = min(_LIN_TK if tk is None else tk, _round_up(K, 128))
    Mp, Np, Kp = _round_up(M, tm), _round_up(N, tn), _round_up(K, tk)
    if (Mp, Kp) != (M, K):
        x = jnp.pad(x, ((0, Mp - M), (0, Kp - K)))
    if (Kp, Np) != (K, N):
        w = jnp.pad(w, ((0, Kp - K), (0, Np - N)))
    cost = pl.CostEstimate(
        flops=2 * Mp * Np * Kp, transcendentals=0,
        bytes_accessed=Mp * Kp * 2 + Kp * Np * 2
        + Mp * Np * jnp.dtype(out_dtype).itemsize)
    out = pl.pallas_call(
        _matmul_kernel,
        out_shape=jax.ShapeDtypeStruct((Mp, Np), out_dtype),
        grid=(Mp // tm, Np // tn, Kp // tk),
        in_specs=[pl.BlockSpec((tm, tk), lambda i, j, k: (i, k)),
                  pl.BlockSpec((tk, tn), lambda i, j, k: (k, j))],
        out_specs=pl.BlockSpec((tm, tn), lambda i, j, k: (i, j)),
        scratch_shapes=[pltpu.VMEM((tm, tn), jnp.float32)],
        compiler_params=pltpu.CompilerParams(
            dimension_semantics=("parallel", "parallel", "arbitrary"),
            vmem_limit_bytes=_VMEM_LIMIT),
        cost_estimate=cost,
    )(x, w)
    if (Mp, Np) != (M, N):
        out = out[:M, :N]
    return out


# ----------- selection score: q @ k_compress^T + future-chunk mask ----------

def _score_kernel(q_ref, kc_ref, o_ref, *, chunk_size, tq):
    # q_ref: (tq, dh) bf16, kc_ref: (G, dh) bf16, o_ref: (tq, G) f32
    s = lax.dot_general(q_ref[...], kc_ref[...], (((1,), (1,)), ((), ())),
                        preferred_element_type=jnp.float32)
    row = tq * pl.program_id(2) + lax.broadcasted_iota(jnp.int32, s.shape, 0)
    col = lax.broadcasted_iota(jnp.int32, s.shape, 1)
    # PyTorch mask: positions with row >= chunk_size*col are filled with -inf
    # (only strictly-future chunks stay selectable) — faithful to the spec.
    o_ref[...] = jnp.where(row >= chunk_size * col, jnp.float32(-jnp.inf), s)


def _chunk_score(q_bh, kc_bh, *, chunk_size):
    b, h, n, dh = q_bh.shape
    G = kc_bh.shape[2]
    tq = _pick_tile_mult8(n, 512)
    cost = pl.CostEstimate(
        flops=2 * b * h * n * G * dh, transcendentals=0,
        bytes_accessed=2 * b * h * (n * dh + G * dh) + 4 * b * h * n * G)
    return pl.pallas_call(
        functools.partial(_score_kernel, chunk_size=chunk_size, tq=tq),
        out_shape=jax.ShapeDtypeStruct((b, h, n, G), jnp.float32),
        grid=(b, h, n // tq),
        in_specs=[
            pl.BlockSpec((None, None, tq, dh),
                         lambda bi, hi, ni: (bi, hi, ni, 0)),
            pl.BlockSpec((None, None, G, dh),
                         lambda bi, hi, ni: (bi, hi, 0, 0)),
        ],
        out_specs=pl.BlockSpec((None, None, tq, G),
                               lambda bi, hi, ni: (bi, hi, ni, 0)),
        compiler_params=pltpu.CompilerParams(
            dimension_semantics=("parallel", "parallel", "parallel"),
            vmem_limit_bytes=_VMEM_LIMIT),
        cost_estimate=cost,
    )(q_bh, kc_bh)


# ---------- top-k sparse inter-chunk attention (in-kernel DMA gather) --------

def _inter_kernel(q_ref, idx_hbm, k_hbm, v_hbm, o_ref,
                  idx_smem, kbuf, vbuf, sem_idx, sem,
                  *, top_k, scale, num_chunks):
    bi = pl.program_id(0)
    hi = pl.program_id(1)
    ni = pl.program_id(2)
    h = pl.num_programs(1)
    nb = pl.num_programs(2)
    tq = q_ref.shape[0]
    c = kbuf.shape[2]
    dh = kbuf.shape[3]

    # DMA this query block's (tq, top_k) chunk indices HBM -> SMEM.
    step = (bi * h + hi) * nb + ni
    idx_cp = pltpu.make_async_copy(idx_hbm.at[step], idx_smem, sem_idx.at[0])
    idx_cp.start()

    base = (bi * h + hi) * num_chunks

    def start_row(row, slot):
        for ki in range(top_k):
            g = base + idx_smem[row, ki]
            pltpu.make_async_copy(k_hbm.at[g], kbuf.at[slot, ki],
                                  sem.at[slot, 0, ki]).start()
            pltpu.make_async_copy(v_hbm.at[g], vbuf.at[slot, ki],
                                  sem.at[slot, 1, ki]).start()

    def wait_row(slot):
        for ki in range(top_k):
            pltpu.make_async_copy(k_hbm.at[0], kbuf.at[slot, ki],
                                  sem.at[slot, 0, ki]).wait()
            pltpu.make_async_copy(v_hbm.at[0], vbuf.at[slot, ki],
                                  sem.at[slot, 1, ki]).wait()

    idx_cp.wait()
    start_row(0, 0)

    dims = (((1,), (1,)), ((), ()))

    def body(row, carry):
        slot = row & 1
        wait_row(slot)

        @pl.when(row + 1 < tq)
        def _():
            start_row(row + 1, 1 - slot)

        q = q_ref[pl.ds(row, 1), :]                            # (1, dh) bf16
        kk = kbuf[slot].reshape(top_k * c, dh)                 # gathered keys
        vv = vbuf[slot].reshape(top_k * c, dh)                 # gathered values
        s = lax.dot_general(q, kk, dims,
                            preferred_element_type=jnp.float32) * scale
        m = jnp.max(s, axis=-1, keepdims=True)
        p = jnp.exp(s - m)
        l = jnp.sum(p, axis=-1, keepdims=True)
        o = jnp.dot(p.astype(vv.dtype), vv,
                    preferred_element_type=jnp.float32)        # (1, dh)
        o_ref[pl.ds(row, 1), :] = (o * pl.reciprocal(l, approx=True)
                                   ).astype(o_ref.dtype)
        return carry

    lax.fori_loop(0, tq, body, 0)


def _inter_attention(q_bh, idx, k_bh, v_bh, *, top_k, scale, chunk_size):
    b, h, n, dh = q_bh.shape
    c = chunk_size
    G = n // c
    tq = _pick_tile_mult8(n, 128)
    nb = n // tq
    k_flat = k_bh.reshape(b * h * G, c, dh)
    v_flat = v_bh.reshape(b * h * G, c, dh)
    idx3 = idx.reshape(b * h * nb, tq, top_k)

    q_spec = pl.BlockSpec((None, None, tq, dh),
                          lambda bi, hi, ni: (bi, hi, ni, 0))
    o_spec = pl.BlockSpec((None, None, tq, dh),
                          lambda bi, hi, ni: (bi, hi, ni, 0))
    any_spec = pl.BlockSpec(memory_space=pl.ANY)
    cost = pl.CostEstimate(
        flops=4 * b * h * n * top_k * c * dh,
        transcendentals=b * h * n * top_k * c,
        bytes_accessed=4 * b * h * n * dh
        + 4 * b * h * n * top_k * c * dh + 4 * b * h * n * top_k)
    return pl.pallas_call(
        functools.partial(_inter_kernel, top_k=top_k, scale=scale,
                          num_chunks=G),
        out_shape=jax.ShapeDtypeStruct((b, h, n, dh), jnp.bfloat16),
        grid=(b, h, nb),
        in_specs=[q_spec, any_spec, any_spec, any_spec],
        out_specs=o_spec,
        scratch_shapes=[
            pltpu.SMEM((tq, top_k), jnp.int32),
            pltpu.VMEM((2, top_k, c, dh), jnp.bfloat16),
            pltpu.VMEM((2, top_k, c, dh), jnp.bfloat16),
            pltpu.SemaphoreType.DMA((1,)),
            pltpu.SemaphoreType.DMA((2, 2, top_k)),
        ],
        compiler_params=pltpu.CompilerParams(
            dimension_semantics=("parallel", "parallel", "parallel"),
            vmem_limit_bytes=_VMEM_LIMIT),
        cost_estimate=cost,
    )(q_bh, idx3, k_flat, v_flat)


# -------- causal intra-chunk attention, batched, fused with gate combine -----

def _intra_gate_kernel(q_ref, k_ref, v_ref, oi_ref, g_ref, o_ref, *, scale):
    q = q_ref[...]                                   # (Gb, c, dh) bf16
    k = k_ref[...]
    v = v_ref[...]
    s = jnp.einsum('gcd,gkd->gck', q, k,
                   preferred_element_type=jnp.float32) * scale     # (Gb, c, c)
    row = lax.broadcasted_iota(jnp.int32, s.shape, 1)
    col = lax.broadcasted_iota(jnp.int32, s.shape, 2)
    s = jnp.where(row >= col, s, jnp.float32(-jnp.inf))
    m = jnp.max(s, axis=-1, keepdims=True)
    p = jnp.exp(s - m)
    l = jnp.sum(p, axis=-1, keepdims=True)
    o_intra = jnp.einsum('gck,gkd->gcd', p.astype(v.dtype), v,
                         preferred_element_type=jnp.float32)
    o_intra = o_intra * pl.reciprocal(l, approx=True)
    gate = g_ref[...].astype(jnp.float32)            # (Gb, c, 2)
    oi = oi_ref[...].astype(jnp.float32)             # (Gb, c, dh)
    o_ref[...] = (gate[..., 0:1] * oi
                  + gate[..., 1:2] * o_intra).astype(o_ref.dtype)


def _intra_gate_attention(q_bh, k_bh, v_bh, o_inter, gate5, *, scale,
                          chunk_size):
    b, h, n, dh = q_bh.shape
    c = chunk_size
    G = n // c
    Gb = _largest_divisor(G, 8)
    qc5 = q_bh.reshape(b, h, G, c, dh)
    kc5 = k_bh.reshape(b, h, G, c, dh)
    vc5 = v_bh.reshape(b, h, G, c, dh)
    oi5 = o_inter.reshape(b, h, G, c, dh)
    spec5 = pl.BlockSpec((None, None, Gb, c, dh),
                         lambda bi, hi, gi: (bi, hi, gi, 0, 0))
    ospec = pl.BlockSpec((None, None, Gb, c, dh),
                         lambda bi, hi, gi: (bi, hi, gi, 0, 0))
    gspec = pl.BlockSpec((None, None, Gb, c, 2),
                         lambda bi, hi, gi: (bi, hi, gi, 0, 0))
    cost = pl.CostEstimate(
        flops=4 * b * h * G * c * c * dh,
        transcendentals=b * h * G * c * c,
        bytes_accessed=2 * 4 * b * h * n * dh + 4 * b * h * n * 2
        + 2 * b * h * n * dh)
    return pl.pallas_call(
        functools.partial(_intra_gate_kernel, scale=scale),
        out_shape=jax.ShapeDtypeStruct((b, h, G, c, dh), jnp.bfloat16),
        grid=(b, h, G // Gb),
        in_specs=[spec5, spec5, spec5, spec5, gspec],
        out_specs=ospec,
        compiler_params=pltpu.CompilerParams(
            dimension_semantics=("parallel", "parallel", "parallel"),
            vmem_limit_bytes=_VMEM_LIMIT),
        cost_estimate=cost,
    )(qc5, kc5, vc5, oi5, gate5)


# --------------------------------- glue -------------------------------------

def rope(x, base=10000.0):
    # TODO(synk): xmixers' Lrpe internals are not given in the reference
    # snippet; lrpe_type=1 implemented here as standard rotary embedding (XLA).
    b, n, h, dh = x.shape
    half = dh // 2
    inv_freq = base ** (-jnp.arange(half, dtype=jnp.float32) / half)
    ang = jnp.arange(n, dtype=jnp.float32)[:, None] * inv_freq[None, :]
    cos = jnp.cos(ang)[None, :, None, :]
    sin = jnp.sin(ang)[None, :, None, :]
    x1 = x[..., :half]
    x2 = x[..., half:]
    return jnp.concatenate([x1 * cos - x2 * sin, x2 * cos + x1 * sin], axis=-1)


def init_params(key, embed_dim, num_heads, init_std=0.02):
    ks = jax.random.split(key, 5)

    def w(k, shape):
        return init_std * jax.random.normal(k, shape, dtype=jnp.float32)

    return dict(
        wq=w(ks[0], (embed_dim, embed_dim)),
        wk=w(ks[1], (embed_dim, embed_dim)),
        wv=w(ks[2], (embed_dim, embed_dim)),
        wg=w(ks[3], (embed_dim, 2 * num_heads)),
        wo=w(ks[4], (embed_dim, embed_dim)),
    )


def simple_sparse_attention_forward(x, params, *, num_heads, chunk_size, top_k,
                                    base=10000.0, use_lrpe=True):
    b, n, d = x.shape
    h = num_heads
    dh = d // h
    c = chunk_size
    assert n % c == 0, "seq len must be divisible by chunk_size"
    G = n // c
    cdt = jnp.bfloat16
    scale = dh ** -0.5

    wq = params["wq"].astype(cdt)
    wk = params["wk"].astype(cdt)
    wv = params["wv"].astype(cdt)
    wg = params["wg"].astype(cdt)
    wo = params["wo"].astype(cdt)
    w_qkvg = jnp.concatenate([wq, wk, wv, wg], axis=1)       # (d, 3d + 2h)

    xb = x.astype(cdt).reshape(b * n, d)
    qkvg = linear(xb, w_qkvg, out_dtype=cdt)                  # single fused matmul
    q = qkvg[:, :d].reshape(b, n, h, dh)
    k = qkvg[:, d:2 * d].reshape(b, n, h, dh)
    v = qkvg[:, 2 * d:3 * d].reshape(b, n, h, dh)
    g = qkvg[:, 3 * d:].reshape(b, n, h, 2)

    if use_lrpe:
        q = rope(q.astype(jnp.float32), base).astype(cdt)
        k = rope(k.astype(jnp.float32), base).astype(cdt)

    # TODO(synk): head-major transposes kept in XLA (now bf16, half the bytes);
    # fully folding them into the projection out_spec needs a head-blocked GEMM.
    q_bh = jnp.transpose(q, (0, 2, 1, 3))                     # (b, h, n, dh) bf16
    k_bh = jnp.transpose(k, (0, 2, 1, 3))
    v_bh = jnp.transpose(v, (0, 2, 1, 3))

    # Chunk-compressed keys: tiny f32 mean in XLA, bf16 for the score matmul.
    kc_bh = jnp.mean(k_bh.reshape(b, h, G, c, dh).astype(jnp.float32),
                     axis=3).astype(cdt)                      # (b, h, G, dh)

    score = _chunk_score(q_bh, kc_bh, chunk_size=c)           # (b, h, n, G) f32
    # TODO(synk): sort-based top-k has no clean Pallas TPU equivalent; XLA.
    idx = lax.top_k(score, top_k)[1].astype(jnp.int32)        # (b, h, n, top_k)

    o_inter = _inter_attention(q_bh, idx, k_bh, v_bh,
                               top_k=top_k, scale=scale, chunk_size=c)

    gate = jax.nn.softmax(g.astype(jnp.float32), axis=-1)     # (b, n, h, 2)
    gate5 = jnp.transpose(gate, (0, 2, 1, 3)).reshape(b, h, G, c, 2)

    o = _intra_gate_attention(q_bh, k_bh, v_bh, o_inter, gate5,
                              scale=scale, chunk_size=c)      # (b,h,G,c,dh) bf16

    o = jnp.transpose(o.reshape(b, h, n, dh), (0, 2, 1, 3)).reshape(b * n, d)
    return linear(o, wo, out_dtype=jnp.float32).reshape(b, n, d)


# ------------------------- pure-JAX reference check -------------------------

def reference_forward(x, params, *, num_heads, chunk_size, top_k,
                      base=10000.0, use_lrpe=True):
    """Pure-JAX reference mirroring the kernels' bf16-storage/f32-accumulate policy."""
    b, n, d = x.shape
    h = num_heads
    dh = d // h
    c = chunk_size
    G = n // c
    cdt = jnp.bfloat16
    f32 = jnp.float32
    hi_p = lax.Precision.HIGHEST

    def mm(a, w):
        return jnp.dot(a.astype(cdt).astype(f32), w.astype(cdt).astype(f32),
                       precision=hi_p)

    xf = x.reshape(b * n, d)
    q = mm(xf, params["wq"]).astype(cdt).reshape(b, n, h, dh)
    k = mm(xf, params["wk"]).astype(cdt).reshape(b, n, h, dh)
    v = mm(xf, params["wv"]).astype(cdt).reshape(b, n, h, dh)
    gate = jax.nn.softmax(
        mm(xf, params["wg"]).astype(cdt).astype(f32).reshape(b, n, h, 2),
        axis=-1)
    if use_lrpe:
        q = rope(q.astype(f32), base).astype(cdt)
        k = rope(k.astype(f32), base).astype(cdt)

    qb = jnp.transpose(q, (0, 2, 1, 3)).astype(f32)           # (b, h, n, dh)
    kb = jnp.transpose(k, (0, 2, 1, 3)).astype(f32)
    vb = jnp.transpose(v, (0, 2, 1, 3)).astype(f32)
    q5 = qb.reshape(b, h, G, c, dh)
    k5 = kb.reshape(b, h, G, c, dh)
    v5 = vb.reshape(b, h, G, c, dh)

    kc = jnp.mean(k5, axis=3).astype(cdt).astype(f32)         # (b, h, G, dh)
    score = jnp.einsum('bhnd,bhgd->bhng', qb, kc, precision=hi_p)
    mask = jnp.arange(n)[:, None] >= c * jnp.arange(G)[None, :]
    score = jnp.where(mask[None, None], -jnp.inf, score)
    idx = lax.top_k(score, top_k)[1]

    bi = jnp.arange(b)[:, None, None, None]
    hidx = jnp.arange(h)[None, :, None, None]
    k_sel = k5[bi, hidx, idx]                                 # (b,h,n,top_k,c,dh)
    v_sel = v5[bi, hidx, idx]
    scale = dh ** -0.5
    s1 = (jnp.einsum('bhnd,bhnkcd->bhnkc', qb, k_sel, precision=hi_p)
          * scale).reshape(b, h, n, top_k * c)
    a1 = jax.nn.softmax(s1, axis=-1).astype(cdt).astype(f32)
    o_inter = jnp.einsum('bhnm,bhnmd->bhnd', a1,
                         v_sel.reshape(b, h, n, top_k * c, dh), precision=hi_p)
    o_inter = o_inter.astype(cdt).astype(f32)                 # kernel emits bf16

    s2 = jnp.einsum('bhgcd,bhgkd->bhgck', q5, k5, precision=hi_p) * scale
    causal = jnp.arange(c)[:, None] >= jnp.arange(c)[None, :]
    s2 = jnp.where(causal[None, None, None], s2, -jnp.inf)
    a2 = jax.nn.softmax(s2, axis=-1).astype(cdt).astype(f32)
    o_intra = jnp.einsum('bhgck,bhgkd->bhgcd', a2, v5,
                         precision=hi_p).reshape(b, h, n, dh)

    gate_bh = jnp.transpose(gate, (0, 2, 1, 3))               # (b, h, n, 2)
    o = gate_bh[..., 0:1] * o_inter + gate_bh[..., 1:2] * o_intra
    o = jnp.transpose(o, (0, 2, 1, 3)).reshape(b * n, d)
    return mm(o, params["wo"]).reshape(b, n, d)


if __name__ == "__main__":
    key = jax.random.PRNGKey(0)
    k_x, k_p = jax.random.split(key)

    B, N, D = 2, 32, 32        # batch, seq, embed
    H, C, TOPK = 2, 8, 2       # num_heads, chunk_size, token_mixer_top_k

    x = jax.random.normal(k_x, (B, N, D), dtype=jnp.float32)
    params = init_params(k_p, D, H, init_std=0.1)

    out = simple_sparse_attention_forward(
        x, params, num_heads=H, chunk_size=C, top_k=TOPK)
    out = jax.block_until_ready(out)

    ref = reference_forward(x, params, num_heads=H, chunk_size=C, top_k=TOPK)
    ref = jax.block_until_ready(ref)

    assert out.shape == (B, N, D)
    err = float(np.max(np.abs(np.asarray(out) - np.asarray(ref))))
    assert np.allclose(np.asarray(out), np.asarray(ref), atol=2e-2, rtol=2e-2), err
    print("KERNEL_OK")
</pallas_src>

<mosaic_0001>
module attributes {stable_mosaic.version = 11 : i64} {
  func.func @_matmul_kernel(%arg0: i32, %arg1: i32, %arg2: i32, %arg3: memref<64x128xbf16, #tpu.memory_space<vmem>>, %arg4: memref<128x128xbf16, #tpu.memory_space<vmem>>, %arg5: memref<64x128xbf16, #tpu.memory_space<vmem>>, %arg6: memref<64x128xf32, #tpu.memory_space<vmem>>) attributes {dimension_semantics = [#tpu.dimension_semantics<parallel>, #tpu.dimension_semantics<parallel>, #tpu.dimension_semantics<arbitrary>], iteration_bounds = array<i64: 1, 1, 1>, scalar_prefetch = 0 : i64, scratch_operands = 1 : i64, tpu.core_type = #tpu.core_type<tc>, window_params = [{transform_indices = @transform_0, window_bounds = array<i64: 64, 128>}, {transform_indices = @transform_1, window_bounds = array<i64: 128, 128>}, {transform_indices = @transform_2, window_bounds = array<i64: 64, 128>}]} {
    %c0_i32 = arith.constant 0 : i32
    %0 = arith.cmpi eq, %arg2, %c0_i32 : i32
    %1 = arith.extui %0 : i1 to i32
    %c0_i32_0 = arith.constant 0 : i32
    %2 = arith.cmpi ne, %1, %c0_i32_0 : i32
    scf.if %2 {
      %cst_10 = arith.constant 0.000000e+00 : f32
      %12 = vector.broadcast %cst_10 : f32 to vector<64x128xf32>
      %c0_11 = arith.constant 0 : index
      %c0_12 = arith.constant 0 : index
      %13 = vector.load %arg6[%c0_11, %c0_12] : memref<64x128xf32, #tpu.memory_space<vmem>>, vector<64x128xf32>
      tpu.vector_store %arg6[%c0_11, %c0_12], %12 {strides = array<i32>} : memref<64x128xf32, #tpu.memory_space<vmem>>, vector<64x128xf32>,
    } else {
    }
    %c0 = arith.constant 0 : index
    %c0_1 = arith.constant 0 : index
    %3 = vector.load %arg6[%c0, %c0_1] : memref<64x128xf32, #tpu.memory_space<vmem>>, vector<64x128xf32>
    %c0_2 = arith.constant 0 : index
    %c0_3 = arith.constant 0 : index
    %4 = vector.load %arg3[%c0_2, %c0_3] : memref<64x128xbf16, #tpu.memory_space<vmem>>, vector<64x128xbf16>
    %c0_4 = arith.constant 0 : index
    %c0_5 = arith.constant 0 : index
    %5 = vector.load %arg4[%c0_4, %c0_5] : memref<128x128xbf16, #tpu.memory_space<vmem>>, vector<128x128xbf16>
    %cst = arith.constant dense<0.000000e+00> : vector<64x128xf32>
    %6 = tpu.matmul %4, %5, %cst {dimension_numbers = #tpu.dot_dimension_numbers<[1], [0], [0], [1], [0, 0, 1, 1], [], []>} : vector<64x128xbf16>, vector<128x128xbf16>, vector<64x128xf32> -> vector<64x128xf32>
    %7 = arith.addf %3, %6 : vector<64x128xf32>
    %c0_6 = arith.constant 0 : index
    %c0_7 = arith.constant 0 : index
    %8 = vector.load %arg6[%c0_6, %c0_7] : memref<64x128xf32, #tpu.memory_space<vmem>>, vector<64x128xf32>
    tpu.vector_store %arg6[%c0_6, %c0_7], %7 {strides = array<i32>} : memref<64x128xf32, #tpu.memory_space<vmem>>, vector<64x128xf32>,
    %c0_i32_8 = arith.constant 0 : i32
    %9 = arith.cmpi eq, %arg2, %c0_i32_8 : i32
    %10 = arith.extui %9 : i1 to i32
    %c0_i32_9 = arith.constant 0 : i32
    %11 = arith.cmpi ne, %10, %c0_i32_9 : i32
    scf.if %11 {
      %c0_10 = arith.constant 0 : index
      %c0_11 = arith.constant 0 : index
      %12 = vector.load %arg6[%c0_10, %c0_11] : memref<64x128xf32, #tpu.memory_space<vmem>>, vector<64x128xf32>
      %13 = arith.truncf %12 : vector<64x128xf32> to vector<64x128xbf16>
      %c0_12 = arith.constant 0 : index
      %c0_13 = arith.constant 0 : index
      %14 = vector.load %arg5[%c0_12, %c0_13] : memref<64x128xbf16, #tpu.memory_space<vmem>>, vector<64x128xbf16>
      tpu.vector_store %arg5[%c0_12, %c0_13], %13 {strides = array<i32>} : memref<64x128xbf16, #tpu.memory_space<vmem>>, vector<64x128xbf16>,
    } else {
    }
    return
  }
  func.func @transform_0(%arg0: i32, %arg1: i32, %arg2: i32) -> (i32, i32) {
    %c0_i32 = arith.constant 0 : i32
    return %arg0, %arg2 : i32, i32
  }
  func.func @transform_1(%arg0: i32, %arg1: i32, %arg2: i32) -> (i32, i32) {
    %c0_i32 = arith.constant 0 : i32
    return %arg2, %arg1 : i32, i32
  }
  func.func @transform_2(%arg0: i32, %arg1: i32, %arg2: i32) -> (i32, i32) {
    %c0_i32 = arith.constant 0 : i32
    return %arg0, %arg1 : i32, i32
  }
}

</mosaic_0001>

<bundles_post_ra>
// kernel: tpu_custom_call.1
= control target key start
LH: loop header
LB: loop body
LE: loop exit
PB: predicated region body
PF: predicated region fallthrough
CT: control target
= control target key end

     0   :  { %7 = vsyncpa [#allocation4], 0  ;;  %s564_s0 = inlined_call_operand.hbm [shape: bf16[64,128], index: 0, kind: input, shape index: {}]   ;;  %s565_s1 = inlined_call_operand.hbm [shape: bf16[128,128], index: 1, kind: input, shape index: {}]   ;;  %s566_s2 = inlined_call_operand.hbm [shape: bf16[64,128], index: 2, kind: output, shape index: {}]  }
   0x1   :  { %8 = vsyncpa [#allocation7], 0 }
   0x2   :  { %9 = vsyncpa [#allocation5], 0  ;;  %s499_s9 = smov [#allocation3]   ;;  %s427_s13 = scalar_lea.hbm %s564_s0, 512 }
   0x3   :  { %s15_s10 = sshll.u32 %s499_s9, 4  ;;  %p428_p0 = scmp.ne.s32.totalorder %s564_s0, %s427_s13  ;;  %s16_s10 = int_to_ptr.vmem [resolvable:$true] %s15_s10 }
   0x4   :  { %p431_p1 = scmp.lt.u32.totalorder %s427_s13, %s564_s0 }
   0x6   :  { %p433_p2 = pnand %p431_p1, %p428_p0 }
   0x8   :  { %436 = shalt.err (!%p433_p2)
}
   0x9   :  { %s437_s18 = scalar_lea.vmem %s16_s10, 512  ;;  %p442_p4 = scmp.lt.s32.totalorder %s16_s10, %s16_s10 }
   0xa   :  { %p438_p3 = scmp.ne.s32.totalorder %s16_s10, %s437_s18  ;;  %p443_p5 = scmp.lt.s32.totalorder %s437_s18, %s437_s18 }
   0xc   :  { %p444_p6 = por %p443_p5, %p442_p4 }
   0xe   :  { %p445_p7 = pnand %p444_p6, %p438_p3 }
  0x10   :  { %448 = shalt.err (!%p445_p7)
}
  0x11   :  { %s500_s19 = smov 64   ;;  %s501_s20 = smov 4  }
  0x12   :  { %21 = dma.hbm_to_vmem [thread:$0]  %s564_s0, 512, %s16_s10, [#allocation4], %s500_s19, %s500_s19, %s501_s20  }
  0x13   :  { %s502_s23 = smov [#allocation6]   ;;  %s449_s27 = scalar_lea.hbm %s565_s1, 1024 }
  0x14   :  { %s27_s24 = sshll.u32 %s502_s23, 4  ;;  %p450_p8 = scmp.ne.s32.totalorder %s565_s1, %s449_s27  ;;  %s28_s24 = int_to_ptr.vmem [resolvable:$true] %s27_s24 }
  0x15   :  { %p453_p9 = scmp.lt.u32.totalorder %s449_s27, %s565_s1 }
  0x17   :  { %p455_p10 = pnand %p453_p9, %p450_p8 }
  0x19   :  { %458 = shalt.err (!%p455_p10)
}
  0x1a   :  { %s459_s4 = scalar_lea.vmem %s28_s24, 1024  ;;  %p464_p12 = scmp.lt.s32.totalorder %s28_s24, %s28_s24 }
  0x1b   :  { %p460_p11 = scmp.ne.s32.totalorder %s28_s24, %s459_s4  ;;  %p465_p13 = scmp.lt.s32.totalorder %s459_s4, %s459_s4 }
  0x1d   :  { %p466_p0 = por %p465_p13, %p464_p12 }
  0x1f   :  { %p467_p1 = pnand %p466_p0, %p460_p11 }
  0x21   :  { %470 = shalt.err (!%p467_p1)
}
  0x22   :  { %33 = dma.hbm_to_vmem [thread:$0]  %s565_s1, 1024, %s28_s24, [#allocation7], %s500_s19, %s500_s19, %s501_s20  }
  0x23   :  { %493 = dma.done.wait [#allocation4], 512  }
  0x24   :  { %494 = vsyncadd [#allocation4], 4294966784 }
  0x25   :  { %495 = dma.done.wait [#allocation7], 1024  }
  0x26   :  { %496 = vsyncadd [#allocation7], 4294966272  ;;  %v415_v0 = vld [vmem:[#allocation6] sm:$0xff]   ;;  %v416_v1 = vld [vmem:[#allocation6 + $0x8] sm:$0xff]   ;;  %s503_s1 = smov [#allocation8]  }
  0x27   :  { %370 = vmatprep.subr.bf16.mxu0 %v415_v0  ;;  %394 = vmatprep.subr.bf16.mxu1 %v415_v0  ;;  %v417_v2 = vld [vmem:[#allocation6 + $0x10] sm:$0xff]   ;;  %v418_v3 = vld [vmem:[#allocation6 + $0x18] sm:$0xff]   ;;  %v423_v4 = vld [vmem:[#allocation3] sm:$0xff]   ;;  %s294_s6 = sshll.u32 %s503_s1, 4  ;;  %s295_s6 = int_to_ptr.vmem [resolvable:$true] %s294_s6 }
  0x28   :  { %371 = vmatpush3.bf16.msra.mxu0 %v415_v0  ;;  %402 = vmatpush3.bf16.msra.mxu1 %v415_v0  ;;  %v424_v5 = vld [vmem:[#allocation3 + $0x10] sm:$0xff]   ;;  %v419_v6 = vld [vmem:[#allocation6 + $0x20] sm:$0xff]   ;;  %v420_v7 = vld [vmem:[#allocation6 + $0x28] sm:$0xff]   ;;  %s471_s7 = scalar_lea.vmem %s295_s6, 512  ;;  %p476_p3 = scmp.lt.s32.totalorder %s295_s6, %s295_s6 }
  0x29   :  { %372 = vmatprep.subr.bf16.mxu0 %v416_v1  ;;  %395 = vmatprep.subr.bf16.mxu1 %v416_v1  ;;  %v421_v8 = vld [vmem:[#allocation6 + $0x30] sm:$0xff]   ;;  %v422_v9 = vld [vmem:[#allocation6 + $0x38] sm:$0xff]   ;;  %v425_v10 = vld [vmem:[#allocation3 + $0x8] sm:$0xff]   ;;  %p472_p2 = scmp.ne.s32.totalorder %s295_s6, %s471_s7  ;;  %p477_p4 = scmp.lt.s32.totalorder %s471_s7, %s471_s7 }
  0x2a   :  { %386 = vmatprep.mubr.bf16.mxu0 %v423_v4  ;;  %390 = vmatprep.mubr.bf16.mxu1 %v424_v5  ;;  %v426_v11 = vld [vmem:[#allocation3 + $0x18] sm:$0xff]  }
  0x2b   :  { %p478_p5 = por %p477_p4, %p476_p3 }
  0x2c   :  { %373 = vmatpush3.bf16.msra.mxu0 %v416_v1  ;;  %403 = vmatpush3.bf16.msra.mxu1 %v416_v1 }
  0x2d   :  { %374 = vmatprep.subr.bf16.mxu0 %v417_v2  ;;  %396 = vmatprep.subr.bf16.mxu1 %v417_v2  ;;  %p479_p6 = pnand %p478_p5, %p472_p2 }
  0x30   :  { %375 = vmatpush3.bf16.msra.mxu0 %v417_v2  ;;  %404 = vmatpush3.bf16.msra.mxu1 %v417_v2 }
  0x31   :  { %376 = vmatprep.subr.bf16.mxu0 %v418_v3  ;;  %397 = vmatprep.subr.bf16.mxu1 %v418_v3 }
  0x34   :  { %377 = vmatpush3.bf16.msra.mxu0 %v418_v3  ;;  %405 = vmatpush3.bf16.msra.mxu1 %v418_v3 }
  0x35   :  { %378 = vmatprep.subr.bf16.mxu0 %v419_v6  ;;  %398 = vmatprep.subr.bf16.mxu1 %v419_v6 }
  0x38   :  { %379 = vmatpush3.bf16.msra.mxu0 %v419_v6  ;;  %406 = vmatpush3.bf16.msra.mxu1 %v419_v6 }
  0x39   :  { %380 = vmatprep.subr.bf16.mxu0 %v420_v7  ;;  %399 = vmatprep.subr.bf16.mxu1 %v420_v7 }
  0x3c   :  { %381 = vmatpush3.bf16.msra.mxu0 %v420_v7  ;;  %407 = vmatpush3.bf16.msra.mxu1 %v420_v7 }
  0x3d   :  { %382 = vmatprep.subr.bf16.mxu0 %v421_v8  ;;  %400 = vmatprep.subr.bf16.mxu1 %v421_v8 }
  0x40   :  { %383 = vmatpush3.bf16.msra.mxu0 %v421_v8  ;;  %408 = vmatpush3.bf16.msra.mxu1 %v421_v8 }
  0x41   :  { %384 = vmatprep.subr.bf16.mxu0 %v422_v9  ;;  %401 = vmatprep.subr.bf16.mxu1 %v422_v9 }
  0x44   :  { %385 = vmatpush3.bf16.msra.mxu0 %v422_v9  ;;  %409 = vmatpush3.bf16.msra.mxu1 %v422_v9 }
  0x47   :  { %387 = vmatmul.mubr.bf16.vlgmr.msra.gmra.mrb[0].mxu0 %v425_v10  ;;  %391 = vmatmul.mubr.bf16.vlgmr.msra.gmra.mrb[0].mxu1 %v426_v11 }
 0x11a   :  { %v388_v12 = vpop.f32.mrb[0].mxu0  ;;  %v392_v13 = vpop.f32.mrb[0].mxu1 }
 0x11b   :  { %v191_v14 = vpop.f32.mrb[1].mxu0  ;;  %v207_v15 = vpop.f32.mrb[1].mxu1 }
 0x11c   :  { %v389_v16 = vpop.f32.mrb[2].mxu0  ;;  %v393_v17 = vpop.f32.mrb[2].mxu1 }
 0x11d   :  { %v343_v18 = vpack.c.bf16 %v389_v16, %v388_v12  ;;  %v353_v19 = vpack.c.bf16 %v393_v17, %v392_v13  ;;  %v194_v20 = vpop.f32.mrb[3].mxu0  ;;  %v210_v21 = vpop.f32.mrb[3].mxu1 }
 0x11e   :  { %v338_v22 = vpack.c.bf16 %v194_v20, %v191_v14  ;;  %v348_v23 = vpack.c.bf16 %v210_v21, %v207_v15 }
 0x11f   :  { %355 = vst [vmem:[#allocation8 + $0x8] sm:$0xff] %v343_v18   ;;  %357 = vst [vmem:[#allocation8 + $0x18] sm:$0xff] %v353_v19  }
 0x120   :  { %339 = vst [vmem:[#allocation8] sm:$0xff] %v338_v22   ;;  %356 = vst [vmem:[#allocation8 + $0x10] sm:$0xff] %v348_v23  }
 0x121   :  { %482 = shalt.err (!%p479_p6)
}
 0x122   :  { %s483_s10 = scalar_lea.hbm %s566_s2, 512 }
 0x123   :  { %p484_p7 = scmp.ne.s32.totalorder %s566_s2, %s483_s10  ;;  %p487_p8 = scmp.lt.u32.totalorder %s483_s10, %s566_s2 }
 0x125   :  { %p489_p9 = pnand %p487_p8, %p484_p7 }
 0x127   :  { %492 = shalt.err (!%p489_p9)
}
 0x128   :  { %300 = dma.vmem_to_hbm [thread:$0]  %s295_s6, 512, %s566_s2, [#allocation5], %s500_s19, %s500_s19, %s501_s20  }
 0x129   :  { %497 = dma.done.wait [#allocation5], 512  }
 0x12a   :  { %498 = vsyncadd [#allocation5], 4294966784 }
 0x12b   :  { %304 = vsyncpa [#allocation4], 1 }
 0x12c   :  { %305 = vsyncpa [#allocation7], 1 }
 0x12d   :  { %306 = vsyncpa [#allocation5], 1 }

</bundles_post_ra>
